<compile_context>
chip_gen: v5e
topology: v5e:2x2
jax: 0.10.0
libtpu: 0.0.40
codegen_flags: <defaults>
</compile_context>

<pallas_src>
import jax
import jax.numpy as jnp
from jax.experimental import pallas as pl
from jax.experimental.pallas import tpu as pltpu


def _round_up(x, m):
    return (x + m - 1) // m * m


# ---------------------------------------------------------------------------
# Hardware queries (with safe fallbacks so the same code runs anywhere).
# ---------------------------------------------------------------------------
def _vmem_capacity_bytes():
    try:
        info = pltpu.get_tpu_info()
        cap = int(getattr(info, "vmem_capacity_bytes", 128 * 2**20))
        if cap > 0:
            return cap
    except Exception:
        pass
    return 128 * 2**20  # v5e/v6e default; v7x reports 64 MiB via get_tpu_info


def _num_tensorcores():
    # v7x has 2 TensorCores per chip; v5e/v6e have 1.
    try:
        kind = jax.devices()[0].device_kind.lower()
    except Exception:
        return 1
    return 2 if ("v7" in kind or "7x" in kind) else 1


# ---------------------------------------------------------------------------
# Kernel: fused 3-layer MLP on one batch tile, all weights/biases resident.
# ---------------------------------------------------------------------------
def _mlp_kernel(x_ref, w1_ref, b1_ref, w2_ref, b2_ref, w3_ref, b3_ref, o_ref):
    # x arrives as f32 straight from HBM; cast on the VPU (no wrapper-side
    # pad/cast pass over x, no bf16 copy of x in HBM).
    x = x_ref[...].astype(w1_ref.dtype)

    h1 = jnp.dot(x, w1_ref[...], preferred_element_type=jnp.float32) + b1_ref[...]
    h1 = jnp.maximum(h1, 0.2 * h1)            # leaky_relu(0.2): single vmax

    h2 = jnp.dot(h1.astype(w2_ref.dtype), w2_ref[...],
                 preferred_element_type=jnp.float32) + b2_ref[...]
    h2 = jnp.maximum(h2, 0.2 * h2)            # leaky_relu(0.2)

    out = jnp.dot(h2.astype(w3_ref.dtype), w3_ref[...],
                  preferred_element_type=jnp.float32) + b3_ref[...]
    o_ref[...] = out.astype(o_ref.dtype)      # lane-dense f32 store


# ---------------------------------------------------------------------------
# One-time parameter prep: transpose (out,in)->(in,out), pad to 128-multiples,
# cast weights to the MXU compute dtype.  Biases stay f32.
# ---------------------------------------------------------------------------
def prepare_params(params, compute_dtype=jnp.bfloat16):
    ind, hdim1 = params["w1"].shape[1], params["w1"].shape[0]
    hdim2 = params["w2"].shape[0]
    odim = params["w3"].shape[0]
    ind_p, h1_p, h2_p, od_p = (_round_up(d, 128) for d in (ind, hdim1, hdim2, odim))

    def pad_w(w, in_p, out_p):
        w = jnp.asarray(w, jnp.float32).T                      # (in, out)
        w = jnp.pad(w, ((0, in_p - w.shape[0]), (0, out_p - w.shape[1])))
        return w.astype(compute_dtype)

    def pad_b(b, out_p):
        b = jnp.asarray(b, jnp.float32)
        return jnp.pad(b, (0, out_p - b.shape[0]))[None, :]    # (1, out_p) f32

    prepared = {
        "w1": pad_w(params["w1"], ind_p, h1_p), "b1": pad_b(params["b1"], h1_p),
        "w2": pad_w(params["w2"], h1_p, h2_p),  "b2": pad_b(params["b2"], h2_p),
        "w3": pad_w(params["w3"], h2_p, od_p),  "b3": pad_b(params["b3"], od_p),
    }
    dims = {"ind": ind, "odim": odim,
            "ind_p": ind_p, "h1_p": h1_p, "h2_p": h2_p, "od_p": od_p,
            "compute_dtype": compute_dtype}
    return prepared, dims


# ---------------------------------------------------------------------------
# Batch-tile selection: VMEM-aware (per-core budget) + TensorCore-count aware.
# ---------------------------------------------------------------------------
def _choose_batch_tile(B, dims, batch_tile, vmem_cap, num_tc):
    ind_p, h1_p, h2_p, od_p = dims["ind_p"], dims["h1_p"], dims["h2_p"], dims["od_p"]
    c_item = jnp.dtype(dims["compute_dtype"]).itemsize

    B_sub = _round_up(B, 8)
    if B_sub < 128:
        return B_sub                              # tiny batch: one whole tile

    # Per-core VMEM budget: each TensorCore DMAs its own full copy of the
    # (single-buffered) weights; biases are f32.
    weight_bytes = (ind_p * h1_p + h1_p * h2_p + h2_p * od_p) * c_item \
                   + (h1_p + h2_p + od_p) * 4
    budget = int(0.8 * vmem_cap) - weight_bytes
    # Per-row bytes: 2x f32 x tile (double-buffered) + 2x f32 out tile
    # + f32 h1/h2 intermediates + their bf16 copies feeding the next dot
    # + the bf16 cast of x.
    per_row = (2 * ind_p * 4 + 2 * od_p * 4
               + (h1_p + h2_p) * (4 + c_item) + ind_p * c_item)
    if budget <= per_row * 128:
        tb_vmem = 128  # weights nearly fill VMEM -> see K-tiling TODO above
    else:
        tb_vmem = (budget // per_row) // 128 * 128

    tb = min(_round_up(batch_tile, 128), tb_vmem, _round_up(B_sub, 128))

    if num_tc > 1:
        # >= 2 grid steps per TensorCore when the batch allows, so the
        # double-buffered x/out pipeline overlaps DMA with compute.
        per_core = max(128, (B_sub // (2 * num_tc)) // 128 * 128)
        tb = min(tb, per_core)

    return max(tb, 128)


# ---------------------------------------------------------------------------
# Forward wrapper.
# ---------------------------------------------------------------------------
def mlp_forward(x, prepared, dims, *, batch_tile=None, slice_output=True):
    """x: (B, ind) float32.  prepared/dims come from prepare_params()."""
    B, ind = x.shape
    assert ind == dims["ind"], "input feature dim mismatch"
    ind_p, h1_p, h2_p, od_p = dims["ind_p"], dims["h1_p"], dims["h2_p"], dims["od_p"]
    cdt = dims["compute_dtype"]
    c_item = jnp.dtype(cdt).itemsize

    vmem_cap = _vmem_capacity_bytes()
    num_tc = _num_tensorcores()
    if batch_tile is None:
        # Single-TC chips: one big tile wins (mem-bound roofline grows with
        # tile size).  Multi-TC: smaller tiles so both cores stay busy.
        batch_tile = 512 if num_tc > 1 else 1024

    tb = _choose_batch_tile(B, dims, batch_tile, vmem_cap, num_tc)
    B_pad = _round_up(B, tb)
    grid = (B_pad // tb,)

    # Keep x in f32 (kernel casts on the VPU).  Pad only when actually needed.
    x_p = x if x.dtype == jnp.float32 else x.astype(jnp.float32)
    if B_pad != B or ind_p != ind:
        x_p = jnp.pad(x_p, ((0, B_pad - B), (0, ind_p - ind)))

    w1, b1 = prepared["w1"], prepared["b1"]
    w2, b2 = prepared["w2"], prepared["b2"]
    w3, b3 = prepared["w3"], prepared["b3"]

    # Advisory cost estimate for XLA's scheduler.
    flops = 2 * B_pad * (ind_p * h1_p + h1_p * h2_p + h2_p * od_p)
    bytes_accessed = (
        x_p.size * x_p.dtype.itemsize
        + sum(a.size * a.dtype.itemsize for a in prepared.values())
        + B_pad * od_p * 4
    )

    # Per-core VMEM budget (each core holds its own weight copy), clamped to
    # 90% of physical capacity (64 MiB on v7x, 128 MiB on v5e/v6e).
    weight_bytes = (ind_p * h1_p + h1_p * h2_p + h2_p * od_p) * c_item \
                   + (h1_p + h2_p + od_p) * 4
    act_bytes = tb * (2 * ind_p * 4 + 2 * od_p * 4 + (h1_p + h2_p) * 4)
    vmem_limit = int(min(int(0.9 * vmem_cap),
                         max(32 * 2**20, 2 * (weight_bytes + act_bytes))))

    def _const_spec(shape):
        # Weights/biases never change across grid steps -> single buffer.
        return pl.BlockSpec(shape, lambda i: (0, 0), pipeline_mode=pl.Buffered(1))

    out_padded = pl.pallas_call(
        _mlp_kernel,
        out_shape=jax.ShapeDtypeStruct((B_pad, od_p), jnp.float32),
        grid_spec=pltpu.PrefetchScalarGridSpec(
            num_scalar_prefetch=0,
            grid=grid,
            in_specs=[
                pl.BlockSpec((tb, ind_p), lambda i: (i, 0)),   # f32 x tile (streamed)
                _const_spec((ind_p, h1_p)), _const_spec((1, h1_p)),
                _const_spec((h1_p, h2_p)), _const_spec((1, h2_p)),
                _const_spec((h2_p, od_p)), _const_spec((1, od_p)),
            ],
            out_specs=pl.BlockSpec((tb, od_p), lambda i: (i, 0)),
        ),
        compiler_params=pltpu.CompilerParams(
            dimension_semantics=("parallel",),
            vmem_limit_bytes=vmem_limit,
        ),
        cost_estimate=pl.CostEstimate(
            flops=flops, transcendentals=0, bytes_accessed=bytes_accessed),
    )(x_p, w1, b1, w2, b2, w3, b3)

    if not slice_output:
        return out_padded                  # lane-dense (B_pad, od_p), zero-padded
    return out_padded[:B, :dims["odim"]]


# ---------------------------------------------------------------------------
# Helpers for the self-test.
# ---------------------------------------------------------------------------
def init_mlp_params(key, ind, hdim1, hdim2, odim):
    """Deterministic init mimicking nn.Linear default (uniform +/- 1/sqrt(fan_in))."""
    ks = jax.random.split(key, 6)

    def lin(kw, kb, fan_in, fan_out):
        bound = 1.0 / (fan_in ** 0.5)
        w = jax.random.uniform(kw, (fan_out, fan_in), jnp.float32, -bound, bound)
        b = jax.random.uniform(kb, (fan_out,), jnp.float32, -bound, bound)
        return w, b

    w1, b1 = lin(ks[0], ks[1], ind, hdim1)
    w2, b2 = lin(ks[2], ks[3], hdim1, hdim2)
    w3, b3 = lin(ks[4], ks[5], hdim2, odim)
    return {"w1": w1, "b1": b1, "w2": w2, "b2": b2, "w3": w3, "b3": b3}


def mlp_reference(x, p, compute_dtype=jnp.float32):
    """Pure-JAX reference.  With compute_dtype=bf16 it mirrors the kernel's
    bf16-input / f32-accumulate matmuls exactly."""
    def leaky(v):
        return jnp.maximum(v, 0.2 * v)

    def dot(a, w_torch):  # w_torch is PyTorch-layout (out, in)
        a = a.astype(compute_dtype).astype(jnp.float32)
        w = w_torch.T.astype(compute_dtype).astype(jnp.float32)
        return a @ w

    h1 = leaky(dot(x, p["w1"]) + p["b1"])
    h2 = leaky(dot(h1, p["w2"]) + p["b2"])
    return dot(h2, p["w3"]) + p["b3"]


if __name__ == "__main__":
    key = jax.random.PRNGKey(0)
    k_x, k_p = jax.random.split(key)

    B, ind, hdim1, hdim2, odim = 256, 32, 64, 64, 16
    x = jax.random.normal(k_x, (B, ind), jnp.float32)
    params = init_mlp_params(k_p, ind, hdim1, hdim2, odim)

    prepared, dims = prepare_params(params)          # one-time pad/transpose/cast
    out = mlp_forward(x, prepared, dims)
    out = jax.block_until_ready(out)

    assert out.shape == (B, odim)
    # Strict check vs a reference mirroring the kernel's bf16-input matmuls.
    ref_bf16 = mlp_reference(x, params, compute_dtype=jnp.bfloat16)
    assert jnp.allclose(out, ref_bf16, atol=1e-3, rtol=1e-3), \
        "mismatch vs bf16-emulated reference"
    # Loose sanity check vs the pure-f32 PyTorch-equivalent forward (valid only
    # at this small fan-in; bf16 input-rounding error grows with ind/hdim).
    ref_f32 = mlp_reference(x, params, compute_dtype=jnp.float32)
    assert jnp.allclose(out, ref_f32, atol=5e-2, rtol=5e-2), \
        "mismatch vs f32 reference"

    print("KERNEL_OK")
</pallas_src>

<mosaic_0001>
module attributes {stable_mosaic.version = 11 : i64} {
  func.func @_mlp_kernel(%arg0: i32, %arg1: memref<256x128xf32, #tpu.memory_space<vmem>>, %arg2: memref<128x128xbf16, #tpu.memory_space<vmem>>, %arg3: memref<1x128xf32, #tpu.memory_space<vmem>>, %arg4: memref<128x128xbf16, #tpu.memory_space<vmem>>, %arg5: memref<1x128xf32, #tpu.memory_space<vmem>>, %arg6: memref<128x128xbf16, #tpu.memory_space<vmem>>, %arg7: memref<1x128xf32, #tpu.memory_space<vmem>>, %arg8: memref<256x128xf32, #tpu.memory_space<vmem>>) attributes {dimension_semantics = [#tpu.dimension_semantics<parallel>], iteration_bounds = array<i64: 1>, scalar_prefetch = 0 : i64, scratch_operands = 0 : i64, tpu.core_type = #tpu.core_type<tc>, window_params = [{transform_indices = @transform_0, window_bounds = array<i64: 256, 128>}, {pipeline_mode = #tpu.pipeline_mode<synchronous>, transform_indices = @transform_1, window_bounds = array<i64: 128, 128>}, {pipeline_mode = #tpu.pipeline_mode<synchronous>, transform_indices = @transform_2, window_bounds = array<i64: 1, 128>}, {pipeline_mode = #tpu.pipeline_mode<synchronous>, transform_indices = @transform_3, window_bounds = array<i64: 128, 128>}, {pipeline_mode = #tpu.pipeline_mode<synchronous>, transform_indices = @transform_4, window_bounds = array<i64: 1, 128>}, {pipeline_mode = #tpu.pipeline_mode<synchronous>, transform_indices = @transform_5, window_bounds = array<i64: 128, 128>}, {pipeline_mode = #tpu.pipeline_mode<synchronous>, transform_indices = @transform_6, window_bounds = array<i64: 1, 128>}, {transform_indices = @transform_7, window_bounds = array<i64: 256, 128>}]} {
    %c0 = arith.constant 0 : index
    %c0_0 = arith.constant 0 : index
    %0 = vector.load %arg1[%c0, %c0_0] : memref<256x128xf32, #tpu.memory_space<vmem>>, vector<256x128xf32>
    %1 = arith.truncf %0 : vector<256x128xf32> to vector<256x128xbf16>
    %c0_1 = arith.constant 0 : index
    %c0_2 = arith.constant 0 : index
    %2 = vector.load %arg2[%c0_1, %c0_2] : memref<128x128xbf16, #tpu.memory_space<vmem>>, vector<128x128xbf16>
    %cst = arith.constant dense<0.000000e+00> : vector<256x128xf32>
    %3 = tpu.matmul %1, %2, %cst {dimension_numbers = #tpu.dot_dimension_numbers<[1], [0], [0], [1], [0, 0, 1, 1], [], []>} : vector<256x128xbf16>, vector<128x128xbf16>, vector<256x128xf32> -> vector<256x128xf32>
    %c0_3 = arith.constant 0 : index
    %c0_4 = arith.constant 0 : index
    %4 = vector.load %arg3[%c0_3, %c0_4] : memref<1x128xf32, #tpu.memory_space<vmem>>, vector<1x128xf32>
    %5 = vector.broadcast %4 : vector<1x128xf32> to vector<256x128xf32>
    %6 = arith.addf %3, %5 : vector<256x128xf32>
    %cst_5 = arith.constant 2.000000e-01 : f32
    %7 = vector.broadcast %cst_5 : f32 to vector<256x128xf32>
    %8 = arith.mulf %7, %6 : vector<256x128xf32>
    %9 = arith.maximumf %6, %8 : vector<256x128xf32>
    %10 = arith.truncf %9 : vector<256x128xf32> to vector<256x128xbf16>
    %c0_6 = arith.constant 0 : index
    %c0_7 = arith.constant 0 : index
    %11 = vector.load %arg4[%c0_6, %c0_7] : memref<128x128xbf16, #tpu.memory_space<vmem>>, vector<128x128xbf16>
    %cst_8 = arith.constant dense<0.000000e+00> : vector<256x128xf32>
    %12 = tpu.matmul %10, %11, %cst_8 {dimension_numbers = #tpu.dot_dimension_numbers<[1], [0], [0], [1], [0, 0, 1, 1], [], []>} : vector<256x128xbf16>, vector<128x128xbf16>, vector<256x128xf32> -> vector<256x128xf32>
    %c0_9 = arith.constant 0 : index
    %c0_10 = arith.constant 0 : index
    %13 = vector.load %arg5[%c0_9, %c0_10] : memref<1x128xf32, #tpu.memory_space<vmem>>, vector<1x128xf32>
    %14 = vector.broadcast %13 : vector<1x128xf32> to vector<256x128xf32>
    %15 = arith.addf %12, %14 : vector<256x128xf32>
    %cst_11 = arith.constant 2.000000e-01 : f32
    %16 = vector.broadcast %cst_11 : f32 to vector<256x128xf32>
    %17 = arith.mulf %16, %15 : vector<256x128xf32>
    %18 = arith.maximumf %15, %17 : vector<256x128xf32>
    %19 = arith.truncf %18 : vector<256x128xf32> to vector<256x128xbf16>
    %c0_12 = arith.constant 0 : index
    %c0_13 = arith.constant 0 : index
    %20 = vector.load %arg6[%c0_12, %c0_13] : memref<128x128xbf16, #tpu.memory_space<vmem>>, vector<128x128xbf16>
    %cst_14 = arith.constant dense<0.000000e+00> : vector<256x128xf32>
    %21 = tpu.matmul %19, %20, %cst_14 {dimension_numbers = #tpu.dot_dimension_numbers<[1], [0], [0], [1], [0, 0, 1, 1], [], []>} : vector<256x128xbf16>, vector<128x128xbf16>, vector<256x128xf32> -> vector<256x128xf32>
    %c0_15 = arith.constant 0 : index
    %c0_16 = arith.constant 0 : index
    %22 = vector.load %arg7[%c0_15, %c0_16] : memref<1x128xf32, #tpu.memory_space<vmem>>, vector<1x128xf32>
    %23 = vector.broadcast %22 : vector<1x128xf32> to vector<256x128xf32>
    %24 = arith.addf %21, %23 : vector<256x128xf32>
    %c0_17 = arith.constant 0 : index
    %c0_18 = arith.constant 0 : index
    %25 = vector.load %arg8[%c0_17, %c0_18] : memref<256x128xf32, #tpu.memory_space<vmem>>, vector<256x128xf32>
    tpu.vector_store %arg8[%c0_17, %c0_18], %24 {strides = array<i32>} : memref<256x128xf32, #tpu.memory_space<vmem>>, vector<256x128xf32>,
    return
  }
  func.func @transform_0(%arg0: i32) -> (i32, i32) {
    %c0_i32 = arith.constant 0 : i32
    %c0_i32_0 = arith.constant 0 : i32
    return %arg0, %c0_i32 : i32, i32
  }
  func.func @transform_1(%arg0: i32) -> (i32, i32) {
    %c0_i32 = arith.constant 0 : i32
    %c0_i32_0 = arith.constant 0 : i32
    %c0_i32_1 = arith.constant 0 : i32
    return %c0_i32, %c0_i32_0 : i32, i32
  }
  func.func @transform_2(%arg0: i32) -> (i32, i32) {
    %c0_i32 = arith.constant 0 : i32
    %c0_i32_0 = arith.constant 0 : i32
    %c0_i32_1 = arith.constant 0 : i32
    return %c0_i32, %c0_i32_0 : i32, i32
  }
  func.func @transform_3(%arg0: i32) -> (i32, i32) {
    %c0_i32 = arith.constant 0 : i32
    %c0_i32_0 = arith.constant 0 : i32
    %c0_i32_1 = arith.constant 0 : i32
    return %c0_i32, %c0_i32_0 : i32, i32
  }
  func.func @transform_4(%arg0: i32) -> (i32, i32) {
    %c0_i32 = arith.constant 0 : i32
    %c0_i32_0 = arith.constant 0 : i32
    %c0_i32_1 = arith.constant 0 : i32
    return %c0_i32, %c0_i32_0 : i32, i32
  }
  func.func @transform_5(%arg0: i32) -> (i32, i32) {
    %c0_i32 = arith.constant 0 : i32
    %c0_i32_0 = arith.constant 0 : i32
    %c0_i32_1 = arith.constant 0 : i32
    return %c0_i32, %c0_i32_0 : i32, i32
  }
  func.func @transform_6(%arg0: i32) -> (i32, i32) {
    %c0_i32 = arith.constant 0 : i32
    %c0_i32_0 = arith.constant 0 : i32
    %c0_i32_1 = arith.constant 0 : i32
    return %c0_i32, %c0_i32_0 : i32, i32
  }
  func.func @transform_7(%arg0: i32) -> (i32, i32) {
    %c0_i32 = arith.constant 0 : i32
    %c0_i32_0 = arith.constant 0 : i32
    return %arg0, %c0_i32 : i32, i32
  }
}

</mosaic_0001>

<bundles_post_ra>
// kernel: tpu_custom_call.1
= control target key start
LH: loop header
LB: loop body
LE: loop exit
PB: predicated region body
PF: predicated region fallthrough
CT: control target
= control target key end

     0   :  { %12 = vsyncpa [#allocation3], 0  ;;  %s1287_s0 = inlined_call_operand.hbm [shape: f32[256,128], index: 0, kind: input, shape index: {}]   ;;  %s1288_s1 = inlined_call_operand.hbm [shape: bf16[128,128], index: 1, kind: input, shape index: {}]   ;;  %s1289_s2 = inlined_call_operand.vmem [shape: f32[1,128], index: 2, kind: input, shape index: {}]   ;;  %s1290_s3 = inlined_call_operand.hbm [shape: bf16[128,128], index: 3, kind: input, shape index: {}]   ;;  %s1291_s4 = inlined_call_operand.vmem [shape: f32[1,128], index: 4, kind: input, shape index: {}]   ;;  %s1292_s5 = inlined_call_operand.hbm [shape: bf16[128,128], index: 5, kind: input, shape index: {}]   ;;  %s1293_s6 = inlined_call_operand.vmem [shape: f32[1,128], index: 6, kind: input, shape index: {}]   ;;  %s1294_s7 = inlined_call_operand.hbm [shape: f32[256,128], index: 7, kind: output, shape index: {}]  }
   0x1   :  { %13 = vsyncpa [#allocation6], 0 }
   0x2   :  { %14 = vsyncpa [#allocation9], 0  ;;  %s33_s26 = sshll.u32 %s1288_s1, 4  ;;  %s34_s26 = int_to_ptr.hbm [resolvable:$true] %s33_s26 }
   0x3   :  { %15 = vsyncpa [#allocation4], 0  ;;  %s1106_s27 = smov [#allocation5]   ;;  %s20_s8 = sshll.u32 %s1287_s0, 4  ;;  %s21_s8 = int_to_ptr.hbm [resolvable:$true] %s20_s8 }
   0x4   :  { %s35_s28 = sshll.u32 %s1106_s27, 4  ;;  %s1107_s9 = smov 64   ;;  %s36_s28 = int_to_ptr.vmem [resolvable:$true] %s35_s28 }
   0x5   :  { %s1108_s10 = smov 4   ;;  %s1109_s11 = smov [#allocation2]  }
   0x6   :  { %41 = dma.hbm_to_vmem [thread:$0]  %s34_s26, 1024, %s36_s28, [#allocation6], %s1107_s9, %s1107_s9, %s1108_s10  }
   0x7   :  { %s22_s12 = sshll.u32 %s1109_s11, 4  ;;  %s1110_s13 = smov 128   ;;  %s23_s12 = int_to_ptr.vmem [resolvable:$true] %s22_s12 }
   0x8   :  { %s1111_s14 = smov 8   ;;  %s48_s16 = sshll.u32 %s1290_s3, 4  ;;  %s49_s16 = int_to_ptr.hbm [resolvable:$true] %s48_s16 }
   0x9   :  { %28 = dma.hbm_to_vmem [thread:$0]  %s21_s8, 4096, %s23_s12, [#allocation3], %s1110_s13, %s1110_s13, %s1111_s14  }
   0xa   :  { %s1112_s17 = smov [#allocation7]   ;;  %s63_s20 = sshll.u32 %s1292_s5, 4  ;;  %s64_s20 = int_to_ptr.hbm [resolvable:$true] %s63_s20 }
   0xb   :  { %s50_s0 = sshll.u32 %s1112_s17, 4  ;;  %s1113_s21 = smov [#allocation8]   ;;  %s51_s0 = int_to_ptr.vmem [resolvable:$true] %s50_s0 }
   0xc   :  { %56 = dma.hbm_to_vmem [thread:$0]  %s49_s16, 1024, %s51_s0, [#allocation6], %s1107_s9, %s1107_s9, %s1108_s10  }
   0xd   :  { %s65_s22 = sshll.u32 %s1113_s21, 4  ;;  %s66_s22 = int_to_ptr.vmem [resolvable:$true] %s65_s22 }
   0xe   :  { %71 = dma.hbm_to_vmem [thread:$0]  %s64_s20, 1024, %s66_s22, [#allocation9], %s1107_s9, %s1107_s9, %s1108_s10  }
   0xf   :  { %1098 = dma.done.wait [#allocation3], 4096  }
  0x10   :  { %1099 = vsyncadd [#allocation3], 4294963200 }
  0x11   :  { %1100 = dma.done.wait [#allocation6], 2048  }
  0x12   :  { %1101 = vsyncadd [#allocation6], 4294965248 }
  0x13   :  { %1102 = dma.done.wait [#allocation9], 1024  }
  0x14   :  { %1103 = vsyncadd [#allocation9], 4294966272  ;;  %v925_v0 = vld [vmem:[#allocation5 + $0x38] sm:$0xff]  ;;  %v924_v1 = vld [vmem:[#allocation5 + $0x30] sm:$0xff]  ;;  %s807_s28 = sshll.u32 %s1294_s7, 4  ;;  %s808_s28 = int_to_ptr.hbm [resolvable:$true] %s807_s28 }
  0x15   :  { %206 = vmatpush.bf16.msra.mxu0 %v925_v0  ;;  %942 = vmatpush.bf16.msra.mxu3 %v925_v0  ;;  %v923_v2 = vld [vmem:[#allocation5 + $0x28] sm:$0xff]  ;;  %v922_v3 = vld [vmem:[#allocation5 + $0x20] sm:$0xff]  ;;  %v921_v4 = vld [vmem:[#allocation5 + $0x18] sm:$0xff] }
  0x16   :  { %v920_v5 = vld [vmem:[#allocation5 + $0x10] sm:$0xff]  ;;  %v919_v6 = vld [vmem:[#allocation5 + $0x8] sm:$0xff]  ;;  %v918_v7 = vld [vmem:[#allocation5] sm:$0xff] }
  0x17   :  { %v90_v8 = vld [vmem:[#allocation2] sm:$0xff]  ;;  %v91_v9 = vld [vmem:[#allocation2 + $0x8] sm:$0xff]  ;;  %v92_v11 = vld [vmem:[#allocation2 + $0x10] sm:$0xff] }
  0x18   :  { %v122_v10 = vpack.c.bf16 %v91_v9, %v90_v8  ;;  %v93_v12 = vld [vmem:[#allocation2 + $0x18] sm:$0xff]  ;;  %v94_v14 = vld [vmem:[#allocation2 + $0x20] sm:$0xff]  ;;  %v95_v15 = vld [vmem:[#allocation2 + $0x28] sm:$0xff] }
  0x19   :  { %207 = vmatpush.bf16.msra.mxu0 %v924_v1  ;;  %943 = vmatpush.bf16.msra.mxu3 %v924_v1  ;;  %v123_v13 = vpack.c.bf16 %v93_v12, %v92_v11  ;;  %v124_v16 = vpack.c.bf16 %v95_v15, %v94_v14  ;;  %v96_v17 = vld [vmem:[#allocation2 + $0x30] sm:$0xff]  ;;  %v97_v18 = vld [vmem:[#allocation2 + $0x38] sm:$0xff]  ;;  %v114_v20 = vld [vmem:[#allocation2 + $0xc0] sm:$0xff] }
  0x1a   :  { %v125_v19 = vpack.c.bf16 %v97_v18, %v96_v17  ;;  %v115_v21 = vld [vmem:[#allocation2 + $0xc8] sm:$0xff]  ;;  %v98_v23 = vld [vmem:[#allocation2 + $0x40] sm:$0xff]  ;;  %v116_v26 = vld [vmem:[#allocation2 + $0xd0] sm:$0xff] }
  0x1b   :  { %v134_v22 = vpack.c.bf16 %v115_v21, %v114_v20  ;;  %v99_v24 = vld [vmem:[#allocation2 + $0x48] sm:$0xff]  ;;  %v117_v27 = vld [vmem:[#allocation2 + $0xd8] sm:$0xff]  ;;  %v100_v30 = vld [vmem:[#allocation2 + $0x50] sm:$0xff] }
  0x1c   :  { %v126_v25 = vpack.c.bf16 %v99_v24, %v98_v23  ;;  %v933_v28 = vld [vmem:[#allocation7 + $0x38] sm:$0xff]  ;;  %v135_v29 = vpack.c.bf16 %v117_v27, %v116_v26  ;;  %v932_v33 = vld [vmem:[#allocation7 + $0x30] sm:$0xff]  ;;  %v118_v34 = vld [vmem:[#allocation2 + $0xe0] sm:$0xff] }
  0x1d   :  { %208 = vmatpush.bf16.msra.mxu0 %v923_v2  ;;  %944 = vmatpush.bf16.msra.mxu3 %v923_v2  ;;  %v101_v31 = vld [vmem:[#allocation2 + $0x58] sm:$0xff]  ;;  %v119_v35 = vld [vmem:[#allocation2 + $0xe8] sm:$0xff]  ;;  %v930_v38 = vld [vmem:[#allocation7 + $0x20] sm:$0xff] }
  0x1e   :  { %443 = vmatpush.bf16.msra.mxu1 %v933_v28  ;;  %v127_v32 = vpack.c.bf16 %v101_v31, %v100_v30  ;;  %v931_v36 = vld [vmem:[#allocation7 + $0x28] sm:$0xff]  ;;  %v136_v37 = vpack.c.bf16 %v119_v35, %v118_v34  ;;  %v102_v39 = vld [vmem:[#allocation2 + $0x60] sm:$0xff]  ;;  %v929_v42 = vld [vmem:[#allocation7 + $0x18] sm:$0xff] }
  0x1f   :  { %v103_v40 = vld [vmem:[#allocation2 + $0x68] sm:$0xff]  ;;  %v928_v43 = vld [vmem:[#allocation7 + $0x10] sm:$0xff]  ;;  %v121_v46 = vld [vmem:[#allocation2 + $0xf8] sm:$0xff] }
  0x20   :  { %v128_v41 = vpack.c.bf16 %v103_v40, %v102_v39  ;;  %v927_v44 = vld [vmem:[#allocation7 + $0x8] sm:$0xff]  ;;  %v120_v45 = vld [vmem:[#allocation2 + $0xf0] sm:$0xff]  ;;  %v105_v49 = vld [vmem:[#allocation2 + $0x78] sm:$0xff] }
  0x21   :  { %209 = vmatpush.bf16.msra.mxu0 %v922_v3  ;;  %945 = vmatpush.bf16.msra.mxu3 %v922_v3  ;;  %v137_v47 = vpack.c.bf16 %v121_v46, %v120_v45  ;;  %v104_v48 = vld [vmem:[#allocation2 + $0x70] sm:$0xff]  ;;  %v926_v50 = vld [vmem:[#allocation7] sm:$0xff]  ;;  %v107_v53 = vld [vmem:[#allocation2 + $0x88] sm:$0xff] }
  0x22   :  { %444 = vmatpush.bf16.msra.mxu1 %v932_v33  ;;  %v129_v51 = vpack.c.bf16 %v105_v49, %v104_v48  ;;  %v106_v52 = vld [vmem:[#allocation2 + $0x80] sm:$0xff]  ;;  %v108_v62 = vld [vmem:[#allocation2 + $0x90] sm:$0xff]  ;;  %v109_v63 = vld [vmem:[#allocation2 + $0x98] sm:$0xff] }
  0x23   :  { %v130_v54 = vpack.c.bf16 %v107_v53, %v106_v52  ;;  %v1173_v56 = vld [vmem:[%s1289_s2] ss:$0 sm:$0xff]  ;;  %v131_v3 = vpack.c.bf16 %v109_v63, %v108_v62  ;;  %v111_v11 = vld [vmem:[#allocation2 + $0xa8] sm:$0xff]  ;;  %v113_v23 = vld [vmem:[#allocation2 + $0xb8] sm:$0xff] }
  0x25   :  { %210 = vmatpush.bf16.msra.mxu0 %v921_v4  ;;  %946 = vmatpush.bf16.msra.mxu3 %v921_v4 }
  0x26   :  { %445 = vmatpush.bf16.msra.mxu1 %v931_v36 }
  0x29   :  { %211 = vmatpush.bf16.msra.mxu0 %v920_v5  ;;  %947 = vmatpush.bf16.msra.mxu3 %v920_v5 }
  0x2a   :  { %446 = vmatpush.bf16.msra.mxu1 %v930_v38 }
  0x2d   :  { %212 = vmatpush.bf16.msra.mxu0 %v919_v6  ;;  %948 = vmatpush.bf16.msra.mxu3 %v919_v6 }
  0x2e   :  { %447 = vmatpush.bf16.msra.mxu1 %v929_v42 }
  0x31   :  { %213 = vmatpush.bf16.msra.mxu0 %v918_v7  ;;  %949 = vmatpush.bf16.msra.mxu3 %v918_v7 }
  0x32   :  { %448 = vmatpush.bf16.msra.mxu1 %v928_v43 }
  0x34   :  { %214 = vmatmul.bf16.vlgmr.msra.gmra.mxu0 %v122_v10  ;;  %274 = vmatmul.bf16.vlgmr.msra.gmra.mxu3 %v134_v22  ;;  %v110_v10 = vld [vmem:[#allocation2 + $0xa0] sm:$0xff]  ;;  %v112_v22 = vld [vmem:[#allocation2 + $0xb0] sm:$0xff] }
  0x35   :  { %950 = vmatpush.bf16.msrb.mxu3 %v933_v28  ;;  %v132_v15 = vpack.c.bf16 %v111_v11, %v110_v10  ;;  %v133_v27 = vpack.c.bf16 %v113_v23, %v112_v22  ;;  %v941_v10 = vld [vmem:[#allocation8 + $0x38] sm:$0xff] }
  0x36   :  { %449 = vmatpush.bf16.msra.mxu1 %v927_v44  ;;  %680 = vmatpush.bf16.msra.mxu2 %v941_v10 }
  0x39   :  { %951 = vmatpush.bf16.msrb.mxu3 %v932_v33 }
  0x3a   :  { %450 = vmatpush.bf16.msra.mxu1 %v926_v50 }
  0x3d   :  { %952 = vmatpush.bf16.msrb.mxu3 %v931_v36 }
  0x41   :  { %953 = vmatpush.bf16.msrb.mxu3 %v930_v38 }
  0x44   :  { %219 = vmatmul.bf16.gmra.mxu0 %v123_v13  ;;  %279 = vmatmul.bf16.gmra.mxu3 %v135_v29 }
  0x45   :  { %954 = vmatpush.bf16.msrb.mxu3 %v929_v42 }
  0x49   :  { %955 = vmatpush.bf16.msrb.mxu3 %v928_v43 }
  0x4d   :  { %956 = vmatpush.bf16.msrb.mxu3 %v927_v44 }
  0x51   :  { %957 = vmatpush.bf16.msrb.mxu3 %v926_v50 }
  0x54   :  { %224 = vmatmul.bf16.gmra.mxu0 %v124_v16  ;;  %284 = vmatmul.bf16.gmra.mxu3 %v136_v37 }
  0x55   :  { %958 = vmatpush.bf16.msra.mxu3 %v941_v10 }
  0x64   :  { %229 = vmatmul.bf16.gmra.mxu0 %v125_v19  ;;  %289 = vmatmul.bf16.gmra.mxu3 %v137_v47 }
  0x74   :  { %234 = vmatmul.bf16.gmra.mxu0 %v126_v25 }
  0x84   :  { %239 = vmatmul.bf16.gmra.mxu0 %v127_v32 }
  0x94   :  { %244 = vmatmul.bf16.gmra.mxu0 %v128_v41 }
  0xa4   :  { %249 = vmatmul.bf16.gmra.mxu0 %v129_v51 }
  0xb1   :  { %v215_v55 = vpop.f32.mrf.mxu0 }
  0xb2   :  { %v216_v57 = vadd.f32 %v1173_v56, %v215_v55 }
  0xb4   :  { %254 = vmatmul.bf16.gmra.mxu0 %v130_v54  ;;  %v295_v59 = vmul.f32 0.2, %v216_v57 }
  0xb6   :  { %v327_v0 = vmax.f32 %v216_v57, %v295_v59 }
  0xb7   :  { %v275_v36 = vpop.f32.mrf.mxu3 }
  0xb8   :  { %v276_v39 = vadd.f32 %v1173_v56, %v275_v36  ;;  %v936_v36 = vld [vmem:[#allocation8 + $0x10] sm:$0xff] }
  0xb9   :  { %v217_v58 = vpop.f32.mrf.mxu0 }
  0xba   :  { %v218_v60 = vadd.f32 %v1173_v56, %v217_v58  ;;  %v319_v41 = vmul.f32 0.2, %v276_v39 }
  0xbc   :  { %v296_v61 = vmul.f32 0.2, %v218_v60  ;;  %v351_v48 = vmax.f32 %v276_v39, %v319_v41 }
  0xbe   :  { %v328_v1 = vmax.f32 %v218_v60, %v296_v61 }
  0xbf   :  { %v277_v42 = vpop.f32.mrf.mxu3 }
  0xc0   :  { %v359_v2 = vpack.c.bf16 %v328_v1, %v327_v0  ;;  %v278_v43 = vadd.f32 %v1173_v56, %v277_v42 }
  0xc1   :  { %v220_v4 = vpop.f32.mrf.mxu0 }
  0xc2   :  { %451 = vmatmul.bf16.vlgmr.msra.gmra.mxu1 %v359_v2  ;;  %v221_v5 = vadd.f32 %v1173_v56, %v220_v4  ;;  %v320_v45 = vmul.f32 0.2, %v278_v43 }
  0xc4   :  { %259 = vmatmul.bf16.gmra.mxu0 %v131_v3  ;;  %v297_v7 = vmul.f32 0.2, %v221_v5  ;;  %v352_v49 = vmax.f32 %v278_v43, %v320_v45 }
  0xc6   :  { %v329_v12 = vmax.f32 %v221_v5, %v297_v7  ;;  %v371_v54 = vpack.c.bf16 %v352_v49, %v351_v48 }
  0xc7   :  { %v280_v53 = vpop.f32.mrf.mxu3 }
  0xc8   :  { %511 = vmatmul.bf16.vlgmr.msrb.gmra.mxu3 %v371_v54  ;;  %v281_v58 = vadd.f32 %v1173_v56, %v280_v53 }
  0xc9   :  { %v222_v6 = vpop.f32.mrf.mxu0 }
  0xca   :  { %v223_v8 = vadd.f32 %v1173_v56, %v222_v6  ;;  %v321_v60 = vmul.f32 0.2, %v281_v58 }
  0xcc   :  { %v298_v9 = vmul.f32 0.2, %v223_v8  ;;  %v353_v3 = vmax.f32 %v281_v58, %v321_v60 }
  0xce   :  { %v330_v13 = vmax.f32 %v223_v8, %v298_v9 }
  0xcf   :  { %v282_v61 = vpop.f32.mrf.mxu3 }
  0xd0   :  { %v360_v14 = vpack.c.bf16 %v330_v13, %v329_v12  ;;  %v283_v62 = vadd.f32 %v1173_v56, %v282_v61 }
  0xd1   :  { %v225_v16 = vpop.f32.mrf.mxu0 }
  0xd2   :  { %456 = vmatmul.bf16.gmra.mxu1 %v360_v14  ;;  %v226_v17 = vadd.f32 %v1173_v56, %v225_v16  ;;  %v322_v0 = vmul.f32 0.2, %v283_v62  ;;  %v940_v14 = vld [vmem:[#allocation8 + $0x30] sm:$0xff] }
  0xd3   :  { %681 = vmatpush.bf16.msra.mxu2 %v940_v14  ;;  %959 = vmatpush.bf16.msra.mxu3 %v940_v14 }
  0xd4   :  { %264 = vmatmul.bf16.gmra.mxu0 %v132_v15  ;;  %v299_v19 = vmul.f32 0.2, %v226_v17  ;;  %v354_v4 = vmax.f32 %v283_v62, %v322_v0  ;;  %v1204_v0 = vld [vmem:[%s1291_s4] ss:$0 sm:$0xff] }
  0xd6   :  { %v331_v24 = vmax.f32 %v226_v17, %v299_v19  ;;  %v372_v9 = vpack.c.bf16 %v354_v4, %v353_v3  ;;  %v939_v19 = vld [vmem:[#allocation8 + $0x28] sm:$0xff] }
  0xd7   :  { %v285_v8 = vpop.f32.mrf.mxu3  ;;  %682 = vmatpush.bf16.msra.mxu2 %v939_v19  ;;  %960 = vmatpush.bf16.msra.mxu3 %v939_v19 }
  0xd8   :  { %516 = vmatmul.bf16.gmra.mxu3 %v372_v9  ;;  %v286_v13 = vadd.f32 %v1173_v56, %v285_v8 }
  0xd9   :  { %v227_v18 = vpop.f32.mrf.mxu0 }
  0xda   :  { %v228_v20 = vadd.f32 %v1173_v56, %v227_v18  ;;  %v323_v16 = vmul.f32 0.2, %v286_v13 }
  0xdc   :  { %v300_v21 = vmul.f32 0.2, %v228_v20 }
  0xde   :  { %v332_v25 = vmax.f32 %v228_v20, %v300_v21 }
  0xdf   :  { %v287_v17 = vpop.f32.mrf.mxu3 }
  0xe0   :  { %v361_v26 = vpack.c.bf16 %v332_v25, %v331_v24  ;;  %v288_v18 = vadd.f32 %v1173_v56, %v287_v17  ;;  %v355_v24 = vmax.f32 %v286_v13, %v323_v16 }
  0xe1   :  { %v230_v28 = vpop.f32.mrf.mxu0 }
  0xe2   :  { %461 = vmatmul.bf16.gmra.mxu1 %v361_v26  ;;  %v231_v29 = vadd.f32 %v1173_v56, %v230_v28  ;;  %v324_v21 = vmul.f32 0.2, %v288_v18  ;;  %v938_v26 = vld [vmem:[#allocation8 + $0x20] sm:$0xff] }
  0xe3   :  { %683 = vmatpush.bf16.msra.mxu2 %v938_v26  ;;  %961 = vmatpush.bf16.msra.mxu3 %v938_v26 }
  0xe4   :  { %269 = vmatmul.bf16.gmra.mxu0 %v133_v27  ;;  %v301_v31 = vmul.f32 0.2, %v231_v29  ;;  %v356_v25 = vmax.f32 %v288_v18, %v324_v21 }
  0xe6   :  { %v333_v34 = vmax.f32 %v231_v29, %v301_v31 }
  0xe7   :  { %v290_v31 = vpop.f32.mrf.mxu3 }
  0xe9   :  { %v232_v30 = vpop.f32.mrf.mxu0 }
  0xea   :  { %v233_v32 = vadd.f32 %v1173_v56, %v232_v30  ;;  %v373_v30 = vpack.c.bf16 %v356_v25, %v355_v24 }
  0xec   :  { %v302_v33 = vmul.f32 0.2, %v233_v32  ;;  %521 = vmatmul.bf16.gmra.mxu3 %v373_v30 }
  0xee   :  { %v334_v35 = vmax.f32 %v233_v32, %v302_v33  ;;  %v937_v32 = vld [vmem:[#allocation8 + $0x18] sm:$0xff] }
  0xef   :  { %684 = vmatpush.bf16.msra.mxu2 %v937_v32  ;;  %962 = vmatpush.bf16.msra.mxu3 %v937_v32  ;;  %v292_v39 = vpop.f32.mrf.mxu3 }
  0xf0   :  { %v362_v37 = vpack.c.bf16 %v334_v35, %v333_v34  ;;  %v291_v35 = vadd.f32 %v1173_v56, %v290_v31  ;;  %v293_v41 = vadd.f32 %v1173_v56, %v292_v39 }
  0xf1   :  { %v235_v38 = vpop.f32.mrf.mxu0 }
  0xf2   :  { %466 = vmatmul.bf16.gmra.mxu1 %v362_v37  ;;  %v236_v40 = vadd.f32 %v1173_v56, %v235_v38  ;;  %v325_v38 = vmul.f32 0.2, %v291_v35 }
  0xf3   :  { %685 = vmatpush.bf16.msra.mxu2 %v936_v36  ;;  %963 = vmatpush.bf16.msra.mxu3 %v936_v36 }
  0xf4   :  { %v303_v46 = vmul.f32 0.2, %v236_v40  ;;  %v357_v45 = vmax.f32 %v291_v35, %v325_v38 }
  0xf6   :  { %v335_v51 = vmax.f32 %v236_v40, %v303_v46  ;;  %v935_v40 = vld [vmem:[#allocation8 + $0x8] sm:$0xff]  ;;  %v326_v46 = vmul.f32 0.2, %v293_v41 }
  0xf7   :  { %686 = vmatpush.bf16.msra.mxu2 %v935_v40  ;;  %964 = vmatpush.bf16.msra.mxu3 %v935_v40 }
  0xf8   :  { %v358_v49 = vmax.f32 %v293_v41, %v326_v46 }
  0xf9   :  { %v237_v44 = vpop.f32.mrf.mxu0 }
  0xfa   :  { %v238_v47 = vadd.f32 %v1173_v56, %v237_v44 }
  0xfc   :  { %v304_v50 = vmul.f32 0.2, %v238_v47 }
  0xfe   :  { %v336_v52 = vmax.f32 %v238_v47, %v304_v50  ;;  %v934_v47 = vld [vmem:[#allocation8] sm:$0xff] }
  0xff   :  { %687 = vmatpush.bf16.msra.mxu2 %v934_v47  ;;  %965 = vmatpush.bf16.msra.mxu3 %v934_v47 }
 0x100   :  { %v363_v55 = vpack.c.bf16 %v336_v52, %v335_v51  ;;  %v374_v52 = vpack.c.bf16 %v358_v49, %v357_v45 }
 0x101   :  { %v240_v57 = vpop.f32.mrf.mxu0 }
 0x102   :  { %471 = vmatmul.bf16.gmra.mxu1 %v363_v55  ;;  %v241_v59 = vadd.f32 %v1173_v56, %v240_v57  ;;  %526 = vmatmul.bf16.gmra.mxu3 %v374_v52 }
 0x104   :  { %v305_v1 = vmul.f32 0.2, %v241_v59 }
 0x106   :  { %v337_v6 = vmax.f32 %v241_v59, %v305_v1 }
 0x109   :  { %v242_v63 = vpop.f32.mrf.mxu0 }
 0x10a   :  { %v243_v2 = vadd.f32 %v1173_v56, %v242_v63 }
 0x10c   :  { %v306_v5 = vmul.f32 0.2, %v243_v2 }
 0x10e   :  { %v338_v7 = vmax.f32 %v243_v2, %v306_v5 }
 0x110   :  { %v364_v11 = vpack.c.bf16 %v338_v7, %v337_v6 }
 0x111   :  { %v245_v12 = vpop.f32.mrf.mxu0 }
 0x112   :  { %476 = vmatmul.bf16.gmra.mxu1 %v364_v11  ;;  %v246_v15 = vadd.f32 %v1173_v56, %v245_v12 }
 0x114   :  { %v307_v22 = vmul.f32 0.2, %v246_v15 }
 0x116   :  { %v339_v28 = vmax.f32 %v246_v15, %v307_v22 }
 0x119   :  { %v247_v20 = vpop.f32.mrf.mxu0 }
 0x11a   :  { %v248_v23 = vadd.f32 %v1173_v56, %v247_v20 }
 0x11c   :  { %v308_v27 = vmul.f32 0.2, %v248_v23 }
 0x11e   :  { %v340_v29 = vmax.f32 %v248_v23, %v308_v27 }
 0x120   :  { %v365_v33 = vpack.c.bf16 %v340_v29, %v339_v28 }
 0x121   :  { %v250_v34 = vpop.f32.mrf.mxu0 }
 0x122   :  { %481 = vmatmul.bf16.gmra.mxu1 %v365_v33  ;;  %v251_v37 = vadd.f32 %v1173_v56, %v250_v34 }
 0x124   :  { %v309_v43 = vmul.f32 0.2, %v251_v37 }
 0x126   :  { %v341_v50 = vmax.f32 %v251_v37, %v309_v43 }
 0x129   :  { %v252_v42 = vpop.f32.mrf.mxu0 }
 0x12a   :  { %v253_v44 = vadd.f32 %v1173_v56, %v252_v42 }
 0x12c   :  { %v310_v48 = vmul.f32 0.2, %v253_v44 }
 0x12e   :  { %v342_v51 = vmax.f32 %v253_v44, %v310_v48 }
 0x130   :  { %v366_v53 = vpack.c.bf16 %v342_v51, %v341_v50 }
 0x131   :  { %v255_v54 = vpop.f32.mrf.mxu0 }
 0x132   :  { %486 = vmatmul.bf16.gmra.mxu1 %v366_v53  ;;  %v256_v55 = vadd.f32 %v1173_v56, %v255_v54 }
 0x134   :  { %v311_v58 = vmul.f32 0.2, %v256_v55 }
 0x136   :  { %v343_v61 = vmax.f32 %v256_v55, %v311_v58 }
 0x139   :  { %v257_v57 = vpop.f32.mrf.mxu0 }
 0x13a   :  { %v258_v59 = vadd.f32 %v1173_v56, %v257_v57 }
 0x13c   :  { %v312_v60 = vmul.f32 0.2, %v258_v59 }
 0x13e   :  { %v344_v62 = vmax.f32 %v258_v59, %v312_v60 }
 0x13f   :  { %v452_v63 = vpop.f32.mrf.mxu1 }
 0x140   :  { %v367_v1 = vpack.c.bf16 %v344_v62, %v343_v61  ;;  %v453_v3 = vadd.f32 %v1204_v0, %v452_v63 }
 0x141   :  { %v260_v2 = vpop.f32.mrf.mxu0 }
 0x142   :  { %491 = vmatmul.bf16.gmra.mxu1 %v367_v1  ;;  %v261_v4 = vadd.f32 %v1173_v56, %v260_v2  ;;  %v532_v6 = vmul.f32 0.2, %v453_v3 }
 0x144   :  { %v313_v9 = vmul.f32 0.2, %v261_v4  ;;  %v564_v12 = vmax.f32 %v453_v3, %v532_v6 }
 0x146   :  { %v345_v15 = vmax.f32 %v261_v4, %v313_v9 }
 0x147   :  { %v454_v5 = vpop.f32.mrf.mxu1 }
 0x148   :  { %v455_v7 = vadd.f32 %v1204_v0, %v454_v5 }
 0x149   :  { %v262_v8 = vpop.f32.mrf.mxu0 }
 0x14a   :  { %v533_v10 = vmul.f32 0.2, %v455_v7  ;;  %v263_v11 = vadd.f32 %v1173_v56, %v262_v8 }
 0x14b   :  { %v512_v2 = vpop.f32.mrf.mxu3 }
 0x14c   :  { %v565_v13 = vmax.f32 %v455_v7, %v533_v10  ;;  %v314_v14 = vmul.f32 0.2, %v263_v11  ;;  %v513_v4 = vadd.f32 %v1204_v0, %v512_v2 }
 0x14e   :  { %v346_v16 = vmax.f32 %v263_v11, %v314_v14  ;;  %v596_v17 = vpack.c.bf16 %v565_v13, %v564_v12  ;;  %v556_v9 = vmul.f32 0.2, %v513_v4 }
 0x14f   :  { %v457_v18 = vpop.f32.mrf.mxu1 }
 0x150   :  { %688 = vmatmul.bf16.vlgmr.msra.gmra.mxu2 %v596_v17  ;;  %v368_v19 = vpack.c.bf16 %v346_v16, %v345_v15  ;;  %v458_v21 = vadd.f32 %v1204_v0, %v457_v18  ;;  %v588_v15 = vmax.f32 %v513_v4, %v556_v9 }
 0x151   :  { %v265_v20 = vpop.f32.mrf.mxu0 }
 0x152   :  { %496 = vmatmul.bf16.gmra.mxu1 %v368_v19  ;;  %v266_v22 = vadd.f32 %v1173_v56, %v265_v20  ;;  %v534_v24 = vmul.f32 0.2, %v458_v21 }
 0x153   :  { %v514_v10 = vpop.f32.mrf.mxu3 }
 0x154   :  { %v315_v27 = vmul.f32 0.2, %v266_v22  ;;  %v566_v30 = vmax.f32 %v458_v21, %v534_v24  ;;  %v515_v13 = vadd.f32 %v1204_v0, %v514_v10 }
 0x156   :  { %v347_v33 = vmax.f32 %v266_v22, %v315_v27  ;;  %v557_v16 = vmul.f32 0.2, %v515_v13 }
 0x157   :  { %v459_v23 = vpop.f32.mrf.mxu1 }
 0x158   :  { %v460_v25 = vadd.f32 %v1204_v0, %v459_v23  ;;  %v589_v18 = vmax.f32 %v515_v13, %v557_v16 }
 0x159   :  { %v267_v26 = vpop.f32.mrf.mxu0 }
 0x15a   :  { %v535_v28 = vmul.f32 0.2, %v460_v25  ;;  %v268_v29 = vadd.f32 %v1173_v56, %v267_v26  ;;  %v608_v19 = vpack.c.bf16 %v589_v18, %v588_v15 }
 0x15b   :  { %v517_v20 = vpop.f32.mrf.mxu3 }
 0x15c   :  { %v567_v31 = vmax.f32 %v460_v25, %v535_v28  ;;  %v316_v32 = vmul.f32 0.2, %v268_v29  ;;  %748 = vmatmul.bf16.vlgmr.msra.gmra.mxu3 %v608_v19  ;;  %v518_v22 = vadd.f32 %v1204_v0, %v517_v20  ;;  %v1241_v20 = vld [vmem:[%s1293_s6] ss:$0 sm:$0xff]  ;;  %s1114_s6 = smov [#allocation10]  }
 0x15d   :  { %s805_s25 = sshll.u32 %s1114_s6, 4  ;;  %s806_s25 = int_to_ptr.vmem [resolvable:$true] %s805_s25 }
 0x15e   :  { %v348_v34 = vmax.f32 %v268_v29, %v316_v32  ;;  %v597_v35 = vpack.c.bf16 %v567_v31, %v566_v30  ;;  %v558_v27 = vmul.f32 0.2, %v518_v22 }
 0x15f   :  { %v462_v36 = vpop.f32.mrf.mxu1 }
 0x160   :  { %693 = vmatmul.bf16.gmra.mxu2 %v597_v35  ;;  %v369_v37 = vpack.c.bf16 %v348_v34, %v347_v33  ;;  %v463_v39 = vadd.f32 %v1204_v0, %v462_v36  ;;  %v590_v33 = vmax.f32 %v518_v22, %v558_v27 }
 0x161   :  { %v270_v38 = vpop.f32.mrf.mxu0 }
 0x162   :  { %501 = vmatmul.bf16.gmra.mxu1 %v369_v37  ;;  %v271_v40 = vadd.f32 %v1173_v56, %v270_v38  ;;  %v536_v42 = vmul.f32 0.2, %v463_v39 }
 0x163   :  { %v519_v28 = vpop.f32.mrf.mxu3 }
 0x164   :  { %v317_v45 = vmul.f32 0.2, %v271_v40  ;;  %v568_v48 = vmax.f32 %v463_v39, %v536_v42  ;;  %v520_v31 = vadd.f32 %v1204_v0, %v519_v28 }
 0x166   :  { %v349_v51 = vmax.f32 %v271_v40, %v317_v45  ;;  %v559_v34 = vmul.f32 0.2, %v520_v31 }
 0x167   :  { %v464_v41 = vpop.f32.mrf.mxu1 }
 0x168   :  { %v465_v43 = vadd.f32 %v1204_v0, %v464_v41  ;;  %v591_v36 = vmax.f32 %v520_v31, %v559_v34 }
 0x169   :  { %v272_v44 = vpop.f32.mrf.mxu0 }
 0x16a   :  { %v537_v46 = vmul.f32 0.2, %v465_v43  ;;  %v273_v47 = vadd.f32 %v1173_v56, %v272_v44  ;;  %v609_v37 = vpack.c.bf16 %v591_v36, %v590_v33 }
 0x16c   :  { %v569_v49 = vmax.f32 %v465_v43, %v537_v46  ;;  %v318_v50 = vmul.f32 0.2, %v273_v47  ;;  %753 = vmatmul.bf16.gmra.mxu3 %v609_v37 }
 0x16e   :  { %v350_v52 = vmax.f32 %v273_v47, %v318_v50  ;;  %v598_v53 = vpack.c.bf16 %v569_v49, %v568_v48 }
 0x16f   :  { %v467_v54 = vpop.f32.mrf.mxu1  ;;  %v522_v38 = vpop.f32.mrf.mxu3 }
 0x170   :  { %698 = vmatmul.bf16.gmra.mxu2 %v598_v53  ;;  %v370_v55 = vpack.c.bf16 %v350_v52, %v349_v51  ;;  %v468_v57 = vadd.f32 %v1204_v0, %v467_v54  ;;  %v523_v40 = vadd.f32 %v1204_v0, %v522_v38 }
 0x172   :  { %506 = vmatmul.bf16.gmra.mxu1 %v370_v55  ;;  %v538_v59 = vmul.f32 0.2, %v468_v57  ;;  %v560_v45 = vmul.f32 0.2, %v523_v40 }
 0x174   :  { %v570_v62 = vmax.f32 %v468_v57, %v538_v59  ;;  %v592_v51 = vmax.f32 %v523_v40, %v560_v45 }
 0x177   :  { %v469_v58 = vpop.f32.mrf.mxu1  ;;  %v524_v46 = vpop.f32.mrf.mxu3 }
 0x178   :  { %v470_v60 = vadd.f32 %v1204_v0, %v469_v58  ;;  %v525_v49 = vadd.f32 %v1204_v0, %v524_v46 }
 0x17a   :  { %v539_v61 = vmul.f32 0.2, %v470_v60  ;;  %v561_v52 = vmul.f32 0.2, %v525_v49 }
 0x17c   :  { %v571_v63 = vmax.f32 %v470_v60, %v539_v61  ;;  %v593_v54 = vmax.f32 %v525_v49, %v561_v52 }
 0x17e   :  { %v599_v56 = vpack.c.bf16 %v571_v63, %v570_v62  ;;  %v610_v55 = vpack.c.bf16 %v593_v54, %v592_v51 }
 0x17f   :  { %v472_v1 = vpop.f32.mrf.mxu1 }
 0x180   :  { %703 = vmatmul.bf16.gmra.mxu2 %v599_v56  ;;  %v473_v3 = vadd.f32 %v1204_v0, %v472_v1  ;;  %758 = vmatmul.bf16.gmra.mxu3 %v610_v55 }
 0x182   :  { %v540_v6 = vmul.f32 0.2, %v473_v3 }
 0x184   :  { %v572_v11 = vmax.f32 %v473_v3, %v540_v6 }
 0x185   :  { %v527_v57 = vpop.f32.mrf.mxu3 }
 0x186   :  { %v528_v59 = vadd.f32 %v1204_v0, %v527_v57 }
 0x187   :  { %v474_v5 = vpop.f32.mrf.mxu1 }
 0x188   :  { %v475_v7 = vadd.f32 %v1204_v0, %v474_v5  ;;  %v562_v56 = vmul.f32 0.2, %v528_v59 }
 0x18a   :  { %v541_v8 = vmul.f32 0.2, %v475_v7  ;;  %v594_v6 = vmax.f32 %v528_v59, %v562_v56 }
 0x18c   :  { %v573_v12 = vmax.f32 %v475_v7, %v541_v8 }
 0x18d   :  { %v529_v1 = vpop.f32.mrf.mxu3 }
 0x18e   :  { %v600_v14 = vpack.c.bf16 %v573_v12, %v572_v11  ;;  %v530_v4 = vadd.f32 %v1204_v0, %v529_v1 }
 0x18f   :  { %v477_v17 = vpop.f32.mrf.mxu1 }
 0x190   :  { %708 = vmatmul.bf16.gmra.mxu2 %v600_v14  ;;  %v478_v21 = vadd.f32 %v1204_v0, %v477_v17  ;;  %v563_v7 = vmul.f32 0.2, %v530_v4 }
 0x192   :  { %v542_v24 = vmul.f32 0.2, %v478_v21  ;;  %v595_v9 = vmax.f32 %v530_v4, %v563_v7 }
 0x194   :  { %v574_v29 = vmax.f32 %v478_v21, %v542_v24  ;;  %v611_v10 = vpack.c.bf16 %v595_v9, %v594_v6 }
 0x196   :  { %763 = vmatmul.bf16.gmra.mxu3 %v611_v10 }
 0x197   :  { %v479_v23 = vpop.f32.mrf.mxu1 }
 0x198   :  { %v480_v25 = vadd.f32 %v1204_v0, %v479_v23 }
 0x19a   :  { %v543_v26 = vmul.f32 0.2, %v480_v25 }
 0x19c   :  { %v575_v30 = vmax.f32 %v480_v25, %v543_v26 }
 0x19e   :  { %v601_v32 = vpack.c.bf16 %v575_v30, %v574_v29 }
 0x19f   :  { %v482_v35 = vpop.f32.mrf.mxu1 }
 0x1a0   :  { %713 = vmatmul.bf16.gmra.mxu2 %v601_v32  ;;  %v483_v39 = vadd.f32 %v1204_v0, %v482_v35 }
 0x1a2   :  { %v544_v42 = vmul.f32 0.2, %v483_v39 }
 0x1a4   :  { %v576_v47 = vmax.f32 %v483_v39, %v544_v42 }
 0x1a7   :  { %v484_v41 = vpop.f32.mrf.mxu1 }
 0x1a8   :  { %v485_v43 = vadd.f32 %v1204_v0, %v484_v41 }
 0x1aa   :  { %v545_v44 = vmul.f32 0.2, %v485_v43 }
 0x1ac   :  { %v577_v48 = vmax.f32 %v485_v43, %v545_v44 }
 0x1ae   :  { %v602_v50 = vpack.c.bf16 %v577_v48, %v576_v47 }
 0x1af   :  { %v487_v53 = vpop.f32.mrf.mxu1 }
 0x1b0   :  { %718 = vmatmul.bf16.gmra.mxu2 %v602_v50  ;;  %v488_v58 = vadd.f32 %v1204_v0, %v487_v53 }
 0x1b2   :  { %v546_v61 = vmul.f32 0.2, %v488_v58 }
 0x1b4   :  { %v578_v2 = vmax.f32 %v488_v58, %v546_v61 }
 0x1b7   :  { %v489_v60 = vpop.f32.mrf.mxu1 }
 0x1b8   :  { %v490_v62 = vadd.f32 %v1204_v0, %v489_v60 }
 0x1ba   :  { %v547_v63 = vmul.f32 0.2, %v490_v62 }
 0x1bc   :  { %v579_v3 = vmax.f32 %v490_v62, %v547_v63 }
 0x1be   :  { %v603_v5 = vpack.c.bf16 %v579_v3, %v578_v2 }
 0x1bf   :  { %v492_v8 = vpop.f32.mrf.mxu1 }
 0x1c0   :  { %723 = vmatmul.bf16.gmra.mxu2 %v603_v5  ;;  %v493_v11 = vadd.f32 %v1204_v0, %v492_v8 }
 0x1c2   :  { %v548_v13 = vmul.f32 0.2, %v493_v11 }
 0x1c4   :  { %v580_v16 = vmax.f32 %v493_v11, %v548_v13 }
 0x1c7   :  { %v494_v12 = vpop.f32.mrf.mxu1 }
 0x1c8   :  { %v495_v14 = vadd.f32 %v1204_v0, %v494_v12 }
 0x1ca   :  { %v549_v15 = vmul.f32 0.2, %v495_v14 }
 0x1cc   :  { %v581_v17 = vmax.f32 %v495_v14, %v549_v15 }
 0x1ce   :  { %v604_v18 = vpack.c.bf16 %v581_v17, %v580_v16 }
 0x1cf   :  { %v497_v19 = vpop.f32.mrf.mxu1 }
 0x1d0   :  { %728 = vmatmul.bf16.gmra.mxu2 %v604_v18  ;;  %v498_v22 = vadd.f32 %v1204_v0, %v497_v19 }
 0x1d2   :  { %v550_v25 = vmul.f32 0.2, %v498_v22 }
 0x1d3   :  { %v689_v21 = vpop.f32.mrf.mxu2 }
 0x1d4   :  { %v690_v23 = vadd.f32 %v1241_v20, %v689_v21  ;;  %v582_v29 = vmax.f32 %v498_v22, %v550_v25 }
 0x1d6   :  { %769 = vst [vmem:[#allocation10] sm:$0xff] %v690_v23 }
 0x1d7   :  { %v499_v24 = vpop.f32.mrf.mxu1 }
 0x1d8   :  { %v500_v26 = vadd.f32 %v1204_v0, %v499_v24 }
 0x1da   :  { %v551_v27 = vmul.f32 0.2, %v500_v26 }
 0x1db   :  { %v691_v28 = vpop.f32.mrf.mxu2 }
 0x1dc   :  { %v583_v30 = vmax.f32 %v500_v26, %v551_v27  ;;  %v692_v31 = vadd.f32 %v1241_v20, %v691_v28 }
 0x1de   :  { %770 = vst [vmem:[#allocation10 + $0x8] sm:$0xff] %v692_v31  ;;  %v605_v32 = vpack.c.bf16 %v583_v30, %v582_v29 }
 0x1df   :  { %v502_v33 = vpop.f32.mrf.mxu1  ;;  %v749_v1 = vpop.f32.mrf.mxu3 }
 0x1e0   :  { %733 = vmatmul.bf16.gmra.mxu2 %v605_v32  ;;  %v503_v35 = vadd.f32 %v1204_v0, %v502_v33  ;;  %v750_v2 = vadd.f32 %v1241_v20, %v749_v1 }
 0x1e2   :  { %v552_v38 = vmul.f32 0.2, %v503_v35  ;;  %793 = vst [vmem:[#allocation10 + $0xc0] sm:$0xff] %v750_v2 }
 0x1e3   :  { %v694_v34 = vpop.f32.mrf.mxu2 }
 0x1e4   :  { %v695_v36 = vadd.f32 %v1241_v20, %v694_v34  ;;  %v584_v42 = vmax.f32 %v503_v35, %v552_v38 }
 0x1e6   :  { %771 = vst [vmem:[#allocation10 + $0x10] sm:$0xff] %v695_v36 }
 0x1e7   :  { %v504_v37 = vpop.f32.mrf.mxu1  ;;  %v751_v5 = vpop.f32.mrf.mxu3 }
 0x1e8   :  { %v505_v39 = vadd.f32 %v1204_v0, %v504_v37  ;;  %v752_v6 = vadd.f32 %v1241_v20, %v751_v5 }
 0x1ea   :  { %v553_v40 = vmul.f32 0.2, %v505_v39  ;;  %794 = vst [vmem:[#allocation10 + $0xc8] sm:$0xff] %v752_v6 }
 0x1eb   :  { %v696_v41 = vpop.f32.mrf.mxu2 }
 0x1ec   :  { %v585_v43 = vmax.f32 %v505_v39, %v553_v40  ;;  %v697_v44 = vadd.f32 %v1241_v20, %v696_v41 }
 0x1ee   :  { %772 = vst [vmem:[#allocation10 + $0x18] sm:$0xff] %v697_v44  ;;  %v606_v45 = vpack.c.bf16 %v585_v43, %v584_v42 }
 0x1ef   :  { %v507_v46 = vpop.f32.mrf.mxu1  ;;  %v754_v9 = vpop.f32.mrf.mxu3 }
 0x1f0   :  { %738 = vmatmul.bf16.gmra.mxu2 %v606_v45  ;;  %v508_v48 = vadd.f32 %v1204_v0, %v507_v46  ;;  %v755_v10 = vadd.f32 %v1241_v20, %v754_v9 }
 0x1f2   :  { %v554_v51 = vmul.f32 0.2, %v508_v48  ;;  %795 = vst [vmem:[#allocation10 + $0xd0] sm:$0xff] %v755_v10 }
 0x1f3   :  { %v699_v47 = vpop.f32.mrf.mxu2 }
 0x1f4   :  { %v700_v49 = vadd.f32 %v1241_v20, %v699_v47  ;;  %v586_v55 = vmax.f32 %v508_v48, %v554_v51 }
 0x1f6   :  { %773 = vst [vmem:[#allocation10 + $0x20] sm:$0xff] %v700_v49 }
 0x1f7   :  { %v509_v50 = vpop.f32.mrf.mxu1  ;;  %v756_v13 = vpop.f32.mrf.mxu3 }
 0x1f8   :  { %v510_v52 = vadd.f32 %v1204_v0, %v509_v50  ;;  %v757_v14 = vadd.f32 %v1241_v20, %v756_v13 }
 0x1fa   :  { %v555_v53 = vmul.f32 0.2, %v510_v52  ;;  %796 = vst [vmem:[#allocation10 + $0xd8] sm:$0xff] %v757_v14 }
 0x1fb   :  { %v701_v54 = vpop.f32.mrf.mxu2 }
 0x1fc   :  { %v587_v57 = vmax.f32 %v510_v52, %v555_v53  ;;  %v702_v58 = vadd.f32 %v1241_v20, %v701_v54 }
 0x1fe   :  { %774 = vst [vmem:[#allocation10 + $0x28] sm:$0xff] %v702_v58  ;;  %v607_v59 = vpack.c.bf16 %v587_v57, %v586_v55 }
 0x200   :  { %743 = vmatmul.bf16.gmra.mxu2 %v607_v59 }
 0x203   :  { %v704_v60 = vpop.f32.mrf.mxu2  ;;  %v759_v17 = vpop.f32.mrf.mxu3 }
 0x204   :  { %v705_v61 = vadd.f32 %v1241_v20, %v704_v60  ;;  %v760_v18 = vadd.f32 %v1241_v20, %v759_v17 }
 0x206   :  { %775 = vst [vmem:[#allocation10 + $0x30] sm:$0xff] %v705_v61 }
 0x207   :  { %797 = vst [vmem:[#allocation10 + $0xe0] sm:$0xff] %v760_v18 }
 0x20b   :  { %v706_v62 = vpop.f32.mrf.mxu2  ;;  %v761_v22 = vpop.f32.mrf.mxu3 }
 0x20c   :  { %v707_v63 = vadd.f32 %v1241_v20, %v706_v62  ;;  %v762_v23 = vadd.f32 %v1241_v20, %v761_v22 }
 0x20e   :  { %776 = vst [vmem:[#allocation10 + $0x38] sm:$0xff] %v707_v63 }
 0x20f   :  { %798 = vst [vmem:[#allocation10 + $0xe8] sm:$0xff] %v762_v23 }
 0x213   :  { %v709_v56 = vpop.f32.mrf.mxu2 }
 0x214   :  { %v710_v0 = vadd.f32 %v1241_v20, %v709_v56 }
 0x216   :  { %777 = vst [vmem:[#allocation10 + $0x40] sm:$0xff] %v710_v0 }
 0x219   :  { %v764_v26 = vpop.f32.mrf.mxu3 }
 0x21a   :  { %v765_v27 = vadd.f32 %v1241_v20, %v764_v26 }
 0x21b   :  { %v711_v3 = vpop.f32.mrf.mxu2 }
 0x21c   :  { %v712_v4 = vadd.f32 %v1241_v20, %v711_v3  ;;  %799 = vst [vmem:[#allocation10 + $0xf0] sm:$0xff] %v765_v27 }
 0x21e   :  { %778 = vst [vmem:[#allocation10 + $0x48] sm:$0xff] %v712_v4 }
 0x221   :  { %v766_v30 = vpop.f32.mrf.mxu3 }
 0x222   :  { %v767_v31 = vadd.f32 %v1241_v20, %v766_v30 }
 0x223   :  { %v714_v7 = vpop.f32.mrf.mxu2 }
 0x224   :  { %v715_v8 = vadd.f32 %v1241_v20, %v714_v7  ;;  %800 = vst [vmem:[#allocation10 + $0xf8] sm:$0xff] %v767_v31 }
 0x226   :  { %779 = vst [vmem:[#allocation10 + $0x50] sm:$0xff] %v715_v8 }
 0x22b   :  { %v716_v11 = vpop.f32.mrf.mxu2 }
 0x22c   :  { %v717_v12 = vadd.f32 %v1241_v20, %v716_v11 }
 0x22e   :  { %780 = vst [vmem:[#allocation10 + $0x58] sm:$0xff] %v717_v12 }
 0x233   :  { %v719_v15 = vpop.f32.mrf.mxu2 }
 0x234   :  { %v720_v16 = vadd.f32 %v1241_v20, %v719_v15 }
 0x236   :  { %781 = vst [vmem:[#allocation10 + $0x60] sm:$0xff] %v720_v16 }
 0x23b   :  { %v721_v19 = vpop.f32.mrf.mxu2 }
 0x23c   :  { %v722_v21 = vadd.f32 %v1241_v20, %v721_v19 }
 0x23e   :  { %782 = vst [vmem:[#allocation10 + $0x68] sm:$0xff] %v722_v21 }
 0x243   :  { %v724_v24 = vpop.f32.mrf.mxu2 }
 0x244   :  { %v725_v25 = vadd.f32 %v1241_v20, %v724_v24 }
 0x246   :  { %783 = vst [vmem:[#allocation10 + $0x70] sm:$0xff] %v725_v25 }
 0x24b   :  { %v726_v28 = vpop.f32.mrf.mxu2 }
 0x24c   :  { %v727_v29 = vadd.f32 %v1241_v20, %v726_v28 }
 0x24e   :  { %784 = vst [vmem:[#allocation10 + $0x78] sm:$0xff] %v727_v29 }
 0x253   :  { %v729_v32 = vpop.f32.mrf.mxu2 }
 0x254   :  { %v730_v33 = vadd.f32 %v1241_v20, %v729_v32 }
 0x256   :  { %785 = vst [vmem:[#allocation10 + $0x80] sm:$0xff] %v730_v33 }
 0x25b   :  { %v731_v34 = vpop.f32.mrf.mxu2 }
 0x25c   :  { %v732_v35 = vadd.f32 %v1241_v20, %v731_v34 }
 0x25e   :  { %786 = vst [vmem:[#allocation10 + $0x88] sm:$0xff] %v732_v35 }
 0x263   :  { %v734_v36 = vpop.f32.mrf.mxu2 }
 0x264   :  { %v735_v37 = vadd.f32 %v1241_v20, %v734_v36 }
 0x266   :  { %787 = vst [vmem:[#allocation10 + $0x90] sm:$0xff] %v735_v37 }
 0x26b   :  { %v736_v38 = vpop.f32.mrf.mxu2 }
 0x26c   :  { %v737_v39 = vadd.f32 %v1241_v20, %v736_v38 }
 0x26e   :  { %788 = vst [vmem:[#allocation10 + $0x98] sm:$0xff] %v737_v39 }
 0x273   :  { %v739_v40 = vpop.f32.mrf.mxu2 }
 0x274   :  { %v740_v41 = vadd.f32 %v1241_v20, %v739_v40 }
 0x276   :  { %789 = vst [vmem:[#allocation10 + $0xa0] sm:$0xff] %v740_v41 }
 0x27b   :  { %v741_v42 = vpop.f32.mrf.mxu2 }
 0x27c   :  { %v742_v43 = vadd.f32 %v1241_v20, %v741_v42 }
 0x27e   :  { %790 = vst [vmem:[#allocation10 + $0xa8] sm:$0xff] %v742_v43 }
 0x283   :  { %v744_v44 = vpop.f32.mrf.mxu2 }
 0x284   :  { %v745_v45 = vadd.f32 %v1241_v20, %v744_v44 }
 0x286   :  { %791 = vst [vmem:[#allocation10 + $0xb0] sm:$0xff] %v745_v45 }
 0x28b   :  { %v746_v46 = vpop.f32.mrf.mxu2 }
 0x28c   :  { %v747_v47 = vadd.f32 %v1241_v20, %v746_v46 }
 0x28e   :  { %792 = vst [vmem:[#allocation10 + $0xb8] sm:$0xff] %v747_v47 }
 0x28f   :  { %813 = dma.vmem_to_hbm [thread:$0]  %s806_s25, 4096, %s808_s28, [#allocation4], %s1110_s13, %s1110_s13, %s1111_s14  }
 0x290   :  { %1104 = dma.done.wait [#allocation4], 4096  }
 0x291   :  { %1105 = vsyncadd [#allocation4], 4294963200 }
 0x292   :  { %818 = vsyncpa [#allocation3], 1 }
 0x293   :  { %819 = vsyncpa [#allocation6], 1 }
 0x294   :  { %820 = vsyncpa [#allocation9], 1 }
 0x295   :  { %821 = vsyncpa [#allocation4], 1 }

</bundles_post_ra>
